<compile_context>
chip_gen: v7x
topology: tpu7x:2x2x1
jax: 0.10.0
libtpu: 0.0.40
codegen_flags: <defaults>
</compile_context>

<pallas_src>
import functools

import jax
import jax.numpy as jnp
from jax import lax
from jax.experimental import pallas as pl
from jax.experimental.pallas import tpu as pltpu

_LANES = 128            # vreg lane width
_MSE_TILE_ROWS = 4096   # 4096 x 128 f32 = 2 MiB per input per buffer


# ---------------------------------------------------------------------------
# Fused kernel: tiled MSE accumulation (vector accumulator) + CLIP losses
# computed at step 0 + final LAMBDA combine at the last step.
# ---------------------------------------------------------------------------
def _lita_kernel(x_ref, y_ref, img_ref, txt_ref, o_ref, acc_ref, clip_ref, *,
                 inv_count, lam, inv_temp, half_temp, rows_total, ragged):
    i = pl.program_id(0)
    last = pl.num_programs(0) - 1

    # ---- Step 0: init accumulator + compute both CLIP losses ---------------
    # The (2,B,D) embedding blocks have a constant index_map, so they are
    # already resident at step 0; doing the CLIP math here hides it under the
    # DMA-bound MSE stream instead of a serial finalize tail.
    @pl.when(i == 0)
    def _init():
        acc_ref[...] = jnp.zeros_like(acc_ref)

        def clip_scalar(img, txt):
            # Contract on the D axis of both operands -> no explicit .T.
            dims = (((1,), (1,)), ((), ()))
            # logits[a, b] = txt[a] . img[b] / temperature
            logits = lax.dot_general(
                txt, img, dims, preferred_element_type=jnp.float32) * inv_temp
            img_sim = lax.dot_general(
                img, img, dims, preferred_element_type=jnp.float32)
            txt_sim = lax.dot_general(
                txt, txt, dims, preferred_element_type=jnp.float32)

            # targets = softmax((img_sim + txt_sim)/2 * T, axis=-1)
            # per-row max shift (numerically robust).
            t = (img_sim + txt_sim) * half_temp
            e = jnp.exp(t - jnp.max(t, axis=-1, keepdims=True))
            targets = e / jnp.sum(e, axis=-1, keepdims=True)

            # texts_loss  = sum_ab targets[a,b] * (row_lse[a] - logits[a,b])
            # images_loss (of the transposed problem, re-indexed)
            #             = sum_ab targets[a,b] * (col_lse[b] - logits[a,b])
            # -> neither logits.T nor targets.T is ever materialized.
            row_m = jnp.max(logits, axis=-1, keepdims=True)
            row_lse = row_m + jnp.log(
                jnp.sum(jnp.exp(logits - row_m), axis=-1, keepdims=True))
            col_m = jnp.max(logits, axis=0, keepdims=True)
            col_lse = col_m + jnp.log(
                jnp.sum(jnp.exp(logits - col_m), axis=0, keepdims=True))

            texts_sum = jnp.sum(targets * (row_lse - logits))
            images_sum = jnp.sum(targets * (col_lse - logits))
            bsz = img.shape[0]
            return (texts_sum + images_sum) * (0.5 / bsz)

        img = img_ref[...].astype(jnp.float32)
        txt = txt_ref[...].astype(jnp.float32)
        clip_ref[0] = clip_scalar(img[0], txt[0]) + clip_scalar(img[1], txt[1])

    # ---- MSE partial: sublane-only partial sum into a (1,128) accumulator --
    d = x_ref[...].astype(jnp.float32) - y_ref[...].astype(jnp.float32)
    if ragged:
        # Last tile may extend past the array edge (undefined data): mask by
        # global row index so out-of-range rows contribute exactly 0.
        tile_rows = d.shape[0]
        row_idx = i * tile_rows + lax.broadcasted_iota(jnp.int32, d.shape, 0)
        d = jnp.where(row_idx < rows_total, d, jnp.float32(0.0))
    acc_ref[...] += jnp.sum(d * d, axis=0, keepdims=True)

    # ---- Finalize: one cross-lane reduce + scalar combine -------------------
    @pl.when(i == last)
    def _finalize():
        mse = jnp.sum(acc_ref[...]) * inv_count
        o_ref[0, 0] = mse + lam * clip_ref[0]


# ---------------------------------------------------------------------------
# LITALoss.forward
# ---------------------------------------------------------------------------
def lita_loss(outputs, annotation, aesthetic_text, style_text,
              aesthetic_img, style_img, LAMBDA, temperature=1.0):
    # --- MSE inputs: lane-dense (rows, 128) view, no full-array padding -----
    n = outputs.size
    x = outputs.reshape(-1)
    y = annotation.reshape(-1)

    rem = (-n) % _LANES          # only the sub-128 remainder is ever padded
    if rem:
        x = jnp.pad(x, (0, rem))
        y = jnp.pad(y, (0, rem))
    rows = (n + rem) // _LANES
    x = x.reshape(rows, _LANES)
    y = y.reshape(rows, _LANES)

    if rows <= _MSE_TILE_ROWS:
        tile_rows = rows                     # single tile; block == array dims
    else:
        tile_rows = _MSE_TILE_ROWS           # multiple of 8 -> valid block
    n_tiles = pl.cdiv(rows, tile_rows)
    ragged = (rows % tile_rows) != 0         # static: mask last tile in-kernel

    # --- CLIP inputs: stack the two loss instances into one (2, B, D) slab --
    img = jnp.stack([aesthetic_img, style_img]).astype(jnp.float32)
    txt = jnp.stack([aesthetic_text, style_text]).astype(jnp.float32)
    B, D = aesthetic_img.shape

    kernel = functools.partial(
        _lita_kernel,
        inv_count=1.0 / float(n),
        lam=float(LAMBDA),
        inv_temp=1.0 / float(temperature),
        half_temp=0.5 * float(temperature),
        rows_total=rows,
        ragged=ragged,
    )

    cost = pl.CostEstimate(
        flops=3 * n + 12 * B * B * D,
        transcendentals=8 * B * B,
        bytes_accessed=int(x.size * x.dtype.itemsize
                           + y.size * y.dtype.itemsize
                           + img.size * 4 + txt.size * 4 + 4),
    )

    out = pl.pallas_call(
        kernel,
        out_shape=jax.ShapeDtypeStruct((1, 1), jnp.float32),
        grid_spec=pltpu.PrefetchScalarGridSpec(
            num_scalar_prefetch=0,
            grid=(n_tiles,),
            in_specs=[
                pl.BlockSpec((tile_rows, _LANES), lambda i: (i, 0)),
                pl.BlockSpec((tile_rows, _LANES), lambda i: (i, 0)),
                pl.BlockSpec((2, B, D), lambda i: (0, 0, 0)),
                pl.BlockSpec((2, B, D), lambda i: (0, 0, 0)),
            ],
            out_specs=pl.BlockSpec(memory_space=pltpu.SMEM),
            scratch_shapes=[
                pltpu.VMEM((1, _LANES), jnp.float32),   # vector SSE accumulator
                pltpu.SMEM((1,), jnp.float32),          # stashed CLIP sum
            ],
        ),
        compiler_params=pltpu.CompilerParams(
            dimension_semantics=("arbitrary",),   # reduction axis (accumulator)
            vmem_limit_bytes=32 * 1024 * 1024,    # safe on v5e/v6e/v7x
        ),
        cost_estimate=cost,
    )(x, y, img, txt)
    return out[0, 0]


# ---------------------------------------------------------------------------
# Pure-JAX reference (sanity check only).
# ---------------------------------------------------------------------------
def _clip_loss_ref(img, txt, temperature=1.0):
    logits = txt @ img.T / temperature
    t = (img @ img.T + txt @ txt.T) / 2.0 * temperature
    targets = jax.nn.softmax(t, axis=-1)
    texts_loss = jnp.sum(-targets * jax.nn.log_softmax(logits, axis=-1), axis=1)
    images_loss = jnp.sum(-targets.T * jax.nn.log_softmax(logits.T, axis=-1), axis=1)
    return jnp.mean((images_loss + texts_loss) / 2.0)


def _lita_loss_ref(outputs, annotation, aes_txt, sty_txt, aes_img, sty_img, LAMBDA):
    mse = jnp.mean((outputs - annotation) ** 2)
    return (mse + LAMBDA * _clip_loss_ref(aes_img, aes_txt)
            + LAMBDA * _clip_loss_ref(sty_img, sty_txt))


if __name__ == "__main__":
    LAMBDA = 0.5

    key = jax.random.PRNGKey(0)
    k1, k2, k3, k4, k5, k6 = jax.random.split(key, 6)

    # outputs / annotation: NCHW regression targets
    outputs = jax.random.normal(k1, (2, 4, 16, 16), dtype=jnp.float32)
    annotation = jax.random.normal(k2, (2, 4, 16, 16), dtype=jnp.float32)

    # embeddings: (batch=8, dim=32)
    aesthetic_text = jax.random.normal(k3, (8, 32), dtype=jnp.float32)
    style_text = jax.random.normal(k4, (8, 32), dtype=jnp.float32)
    aesthetic_img = jax.random.normal(k5, (8, 32), dtype=jnp.float32)
    style_img = jax.random.normal(k6, (8, 32), dtype=jnp.float32)

    loss = lita_loss(outputs, annotation, aesthetic_text, style_text,
                     aesthetic_img, style_img, LAMBDA)
    loss = jax.block_until_ready(loss)

    ref = _lita_loss_ref(outputs, annotation, aesthetic_text, style_text,
                         aesthetic_img, style_img, LAMBDA)
    assert jnp.allclose(loss, ref, rtol=1e-3, atol=1e-3), (loss, ref)

    print("KERNEL_OK")
</pallas_src>

<mosaic_0001>
module attributes {stable_mosaic.version = 11 : i64} {
  func.func @_lita_kernel(%arg0: i32, %arg1: memref<16x128xf32, #tpu.memory_space<vmem>>, %arg2: memref<16x128xf32, #tpu.memory_space<vmem>>, %arg3: memref<2x8x32xf32, #tpu.memory_space<vmem>>, %arg4: memref<2x8x32xf32, #tpu.memory_space<vmem>>, %arg5: memref<1x1xf32, #tpu.memory_space<smem>>, %arg6: memref<1x128xf32, #tpu.memory_space<vmem>>, %arg7: memref<1xf32, #tpu.memory_space<smem>>) attributes {dimension_semantics = [#tpu.dimension_semantics<arbitrary>], iteration_bounds = array<i64: 1>, scalar_prefetch = 0 : i64, scratch_operands = 2 : i64, tpu.core_type = #tpu.core_type<tc>, window_params = [{transform_indices = @transform_0, window_bounds = array<i64: 16, 128>}, {transform_indices = @transform_1, window_bounds = array<i64: 16, 128>}, {pipeline_mode = #tpu.pipeline_mode<synchronous>, transform_indices = @transform_2, window_bounds = array<i64: 2, 8, 32>}, {pipeline_mode = #tpu.pipeline_mode<synchronous>, transform_indices = @transform_3, window_bounds = array<i64: 2, 8, 32>}, {transform_indices = @transform_4, window_bounds = array<i64: 1, 1>}]} {
    %c0_i32 = arith.constant 0 : i32
    %0 = arith.cmpi eq, %arg0, %c0_i32 : i32
    %1 = arith.extui %0 : i1 to i32
    %c0_i32_0 = arith.constant 0 : i32
    %2 = arith.cmpi ne, %1, %c0_i32_0 : i32
    scf.if %2 {
      %cst_10 = arith.constant 0.000000e+00 : f32
      %15 = vector.broadcast %cst_10 : f32 to vector<1x128xf32>
      %c0_11 = arith.constant 0 : index
      %c0_12 = arith.constant 0 : index
      %16 = vector.load %arg6[%c0_11, %c0_12] : memref<1x128xf32, #tpu.memory_space<vmem>>, vector<1x128xf32>
      tpu.vector_store %arg6[%c0_11, %c0_12], %15 {strides = array<i32>} : memref<1x128xf32, #tpu.memory_space<vmem>>, vector<1x128xf32>,
      %c0_13 = arith.constant 0 : index
      %c0_14 = arith.constant 0 : index
      %c0_15 = arith.constant 0 : index
      %17 = vector.load %arg3[%c0_13, %c0_14, %c0_15] : memref<2x8x32xf32, #tpu.memory_space<vmem>>, vector<2x8x32xf32>
      %c0_16 = arith.constant 0 : index
      %c0_17 = arith.constant 0 : index
      %c0_18 = arith.constant 0 : index
      %18 = vector.load %arg4[%c0_16, %c0_17, %c0_18] : memref<2x8x32xf32, #tpu.memory_space<vmem>>, vector<2x8x32xf32>
      %19 = vector.extract_strided_slice %17 {offsets = [0, 0, 0], sizes = [1, 8, 32], strides = [1, 1, 1]} : vector<2x8x32xf32> to vector<1x8x32xf32>
      %20 = vector.shape_cast %19 : vector<1x8x32xf32> to vector<8x32xf32>
      %21 = vector.extract_strided_slice %18 {offsets = [0, 0, 0], sizes = [1, 8, 32], strides = [1, 1, 1]} : vector<2x8x32xf32> to vector<1x8x32xf32>
      %22 = vector.shape_cast %21 : vector<1x8x32xf32> to vector<8x32xf32>
      %cst_19 = arith.constant dense<0.000000e+00> : vector<8x8xf32>
      %23 = tpu.matmul %22, %20, %cst_19 {dimension_numbers = #tpu.dot_dimension_numbers<[1], [1], [0], [0], [0, 0, 1, 0], [], []>} : vector<8x32xf32>, vector<8x32xf32>, vector<8x8xf32> -> vector<8x8xf32>
      %cst_20 = arith.constant 1.000000e+00 : f32
      %24 = vector.broadcast %cst_20 : f32 to vector<8x8xf32>
      %25 = arith.mulf %23, %24 : vector<8x8xf32>
      %cst_21 = arith.constant dense<0.000000e+00> : vector<8x8xf32>
      %26 = tpu.matmul %20, %20, %cst_21 {dimension_numbers = #tpu.dot_dimension_numbers<[1], [1], [0], [0], [0, 0, 1, 0], [], []>} : vector<8x32xf32>, vector<8x32xf32>, vector<8x8xf32> -> vector<8x8xf32>
      %cst_22 = arith.constant dense<0.000000e+00> : vector<8x8xf32>
      %27 = tpu.matmul %22, %22, %cst_22 {dimension_numbers = #tpu.dot_dimension_numbers<[1], [1], [0], [0], [0, 0, 1, 0], [], []>} : vector<8x32xf32>, vector<8x32xf32>, vector<8x8xf32> -> vector<8x8xf32>
      %28 = arith.addf %26, %27 : vector<8x8xf32>
      %cst_23 = arith.constant 5.000000e-01 : f32
      %29 = vector.broadcast %cst_23 : f32 to vector<8x8xf32>
      %30 = arith.mulf %28, %29 : vector<8x8xf32>
      %cst_24 = arith.constant dense<0xFF800000> : vector<8xf32>
      %31 = vector.multi_reduction <maximumf>, %30, %cst_24 [1] : vector<8x8xf32> to vector<8xf32>
      %32 = vector.shape_cast %31 : vector<8xf32> to vector<8x1xf32>
      %33 = vector.broadcast %32 : vector<8x1xf32> to vector<8x8xf32>
      %34 = arith.subf %30, %33 : vector<8x8xf32>
      %35 = math.exp %34 : vector<8x8xf32>
      %cst_25 = arith.constant dense<0.000000e+00> : vector<8xf32>
      %36 = vector.multi_reduction <add>, %35, %cst_25 [1] : vector<8x8xf32> to vector<8xf32>
      %37 = vector.shape_cast %36 : vector<8xf32> to vector<8x1xf32>
      %38 = vector.broadcast %37 : vector<8x1xf32> to vector<8x8xf32>
      %39 = arith.divf %35, %38 : vector<8x8xf32>
      %cst_26 = arith.constant dense<0xFF800000> : vector<8xf32>
      %40 = vector.multi_reduction <maximumf>, %25, %cst_26 [1] : vector<8x8xf32> to vector<8xf32>
      %41 = vector.shape_cast %40 : vector<8xf32> to vector<8x1xf32>
      %42 = vector.broadcast %41 : vector<8x1xf32> to vector<8x8xf32>
      %43 = arith.subf %25, %42 : vector<8x8xf32>
      %44 = math.exp %43 : vector<8x8xf32>
      %cst_27 = arith.constant dense<0.000000e+00> : vector<8xf32>
      %45 = vector.multi_reduction <add>, %44, %cst_27 [1] : vector<8x8xf32> to vector<8xf32>
      %46 = vector.shape_cast %45 : vector<8xf32> to vector<8x1xf32>
      %47 = math.log %46 : vector<8x1xf32>
      %48 = arith.addf %41, %47 : vector<8x1xf32>
      %cst_28 = arith.constant dense<0xFF800000> : vector<8xf32>
      %49 = vector.multi_reduction <maximumf>, %25, %cst_28 [0] : vector<8x8xf32> to vector<8xf32>
      %50 = vector.shape_cast %49 : vector<8xf32> to vector<1x8xf32>
      %51 = vector.broadcast %50 : vector<1x8xf32> to vector<8x8xf32>
      %52 = arith.subf %25, %51 : vector<8x8xf32>
      %53 = math.exp %52 : vector<8x8xf32>
      %cst_29 = arith.constant dense<0.000000e+00> : vector<8xf32>
      %54 = vector.multi_reduction <add>, %53, %cst_29 [0] : vector<8x8xf32> to vector<8xf32>
      %55 = vector.shape_cast %54 : vector<8xf32> to vector<1x8xf32>
      %56 = math.log %55 : vector<1x8xf32>
      %57 = arith.addf %50, %56 : vector<1x8xf32>
      %58 = vector.broadcast %48 : vector<8x1xf32> to vector<8x8xf32>
      %59 = arith.subf %58, %25 : vector<8x8xf32>
      %60 = arith.mulf %39, %59 : vector<8x8xf32>
      %61 = vector.shape_cast %60 : vector<8x8xf32> to vector<1x8x8xf32>
      %cst_30 = arith.constant dense<0.000000e+00> : vector<1xf32>
      %62 = vector.multi_reduction <add>, %61, %cst_30 [1, 2] : vector<1x8x8xf32> to vector<1xf32>
      %63 = vector.shape_cast %62 : vector<1xf32> to vector<1x1x1xf32>
      %64 = vector.extract %63[0, 0, 0] : f32 from vector<1x1x1xf32>
      %65 = vector.broadcast %57 : vector<1x8xf32> to vector<8x8xf32>
      %66 = arith.subf %65, %25 : vector<8x8xf32>
      %67 = arith.mulf %39, %66 : vector<8x8xf32>
      %68 = vector.shape_cast %67 : vector<8x8xf32> to vector<1x8x8xf32>
      %cst_31 = arith.constant dense<0.000000e+00> : vector<1xf32>
      %69 = vector.multi_reduction <add>, %68, %cst_31 [1, 2] : vector<1x8x8xf32> to vector<1xf32>
      %70 = vector.shape_cast %69 : vector<1xf32> to vector<1x1x1xf32>
      %71 = vector.extract %70[0, 0, 0] : f32 from vector<1x1x1xf32>
      %72 = arith.addf %64, %71 : f32
      %cst_32 = arith.constant 6.250000e-02 : f32
      %73 = arith.mulf %72, %cst_32 : f32
      %74 = vector.extract_strided_slice %17 {offsets = [1, 0, 0], sizes = [1, 8, 32], strides = [1, 1, 1]} : vector<2x8x32xf32> to vector<1x8x32xf32>
      %75 = vector.shape_cast %74 : vector<1x8x32xf32> to vector<8x32xf32>
      %76 = vector.extract_strided_slice %18 {offsets = [1, 0, 0], sizes = [1, 8, 32], strides = [1, 1, 1]} : vector<2x8x32xf32> to vector<1x8x32xf32>
      %77 = vector.shape_cast %76 : vector<1x8x32xf32> to vector<8x32xf32>
      %cst_33 = arith.constant dense<0.000000e+00> : vector<8x8xf32>
      %78 = tpu.matmul %77, %75, %cst_33 {dimension_numbers = #tpu.dot_dimension_numbers<[1], [1], [0], [0], [0, 0, 1, 0], [], []>} : vector<8x32xf32>, vector<8x32xf32>, vector<8x8xf32> -> vector<8x8xf32>
      %cst_34 = arith.constant 1.000000e+00 : f32
      %79 = vector.broadcast %cst_34 : f32 to vector<8x8xf32>
      %80 = arith.mulf %78, %79 : vector<8x8xf32>
      %cst_35 = arith.constant dense<0.000000e+00> : vector<8x8xf32>
      %81 = tpu.matmul %75, %75, %cst_35 {dimension_numbers = #tpu.dot_dimension_numbers<[1], [1], [0], [0], [0, 0, 1, 0], [], []>} : vector<8x32xf32>, vector<8x32xf32>, vector<8x8xf32> -> vector<8x8xf32>
      %cst_36 = arith.constant dense<0.000000e+00> : vector<8x8xf32>
      %82 = tpu.matmul %77, %77, %cst_36 {dimension_numbers = #tpu.dot_dimension_numbers<[1], [1], [0], [0], [0, 0, 1, 0], [], []>} : vector<8x32xf32>, vector<8x32xf32>, vector<8x8xf32> -> vector<8x8xf32>
      %83 = arith.addf %81, %82 : vector<8x8xf32>
      %cst_37 = arith.constant 5.000000e-01 : f32
      %84 = vector.broadcast %cst_37 : f32 to vector<8x8xf32>
      %85 = arith.mulf %83, %84 : vector<8x8xf32>
      %cst_38 = arith.constant dense<0xFF800000> : vector<8xf32>
      %86 = vector.multi_reduction <maximumf>, %85, %cst_38 [1] : vector<8x8xf32> to vector<8xf32>
      %87 = vector.shape_cast %86 : vector<8xf32> to vector<8x1xf32>
      %88 = vector.broadcast %87 : vector<8x1xf32> to vector<8x8xf32>
      %89 = arith.subf %85, %88 : vector<8x8xf32>
      %90 = math.exp %89 : vector<8x8xf32>
      %cst_39 = arith.constant dense<0.000000e+00> : vector<8xf32>
      %91 = vector.multi_reduction <add>, %90, %cst_39 [1] : vector<8x8xf32> to vector<8xf32>
      %92 = vector.shape_cast %91 : vector<8xf32> to vector<8x1xf32>
      %93 = vector.broadcast %92 : vector<8x1xf32> to vector<8x8xf32>
      %94 = arith.divf %90, %93 : vector<8x8xf32>
      %cst_40 = arith.constant dense<0xFF800000> : vector<8xf32>
      %95 = vector.multi_reduction <maximumf>, %80, %cst_40 [1] : vector<8x8xf32> to vector<8xf32>
      %96 = vector.shape_cast %95 : vector<8xf32> to vector<8x1xf32>
      %97 = vector.broadcast %96 : vector<8x1xf32> to vector<8x8xf32>
      %98 = arith.subf %80, %97 : vector<8x8xf32>
      %99 = math.exp %98 : vector<8x8xf32>
      %cst_41 = arith.constant dense<0.000000e+00> : vector<8xf32>
      %100 = vector.multi_reduction <add>, %99, %cst_41 [1] : vector<8x8xf32> to vector<8xf32>
      %101 = vector.shape_cast %100 : vector<8xf32> to vector<8x1xf32>
      %102 = math.log %101 : vector<8x1xf32>
      %103 = arith.addf %96, %102 : vector<8x1xf32>
      %cst_42 = arith.constant dense<0xFF800000> : vector<8xf32>
      %104 = vector.multi_reduction <maximumf>, %80, %cst_42 [0] : vector<8x8xf32> to vector<8xf32>
      %105 = vector.shape_cast %104 : vector<8xf32> to vector<1x8xf32>
      %106 = vector.broadcast %105 : vector<1x8xf32> to vector<8x8xf32>
      %107 = arith.subf %80, %106 : vector<8x8xf32>
      %108 = math.exp %107 : vector<8x8xf32>
      %cst_43 = arith.constant dense<0.000000e+00> : vector<8xf32>
      %109 = vector.multi_reduction <add>, %108, %cst_43 [0] : vector<8x8xf32> to vector<8xf32>
      %110 = vector.shape_cast %109 : vector<8xf32> to vector<1x8xf32>
      %111 = math.log %110 : vector<1x8xf32>
      %112 = arith.addf %105, %111 : vector<1x8xf32>
      %113 = vector.broadcast %103 : vector<8x1xf32> to vector<8x8xf32>
      %114 = arith.subf %113, %80 : vector<8x8xf32>
      %115 = arith.mulf %94, %114 : vector<8x8xf32>
      %116 = vector.shape_cast %115 : vector<8x8xf32> to vector<1x8x8xf32>
      %cst_44 = arith.constant dense<0.000000e+00> : vector<1xf32>
      %117 = vector.multi_reduction <add>, %116, %cst_44 [1, 2] : vector<1x8x8xf32> to vector<1xf32>
      %118 = vector.shape_cast %117 : vector<1xf32> to vector<1x1x1xf32>
      %119 = vector.extract %118[0, 0, 0] : f32 from vector<1x1x1xf32>
      %120 = vector.broadcast %112 : vector<1x8xf32> to vector<8x8xf32>
      %121 = arith.subf %120, %80 : vector<8x8xf32>
      %122 = arith.mulf %94, %121 : vector<8x8xf32>
      %123 = vector.shape_cast %122 : vector<8x8xf32> to vector<1x8x8xf32>
      %cst_45 = arith.constant dense<0.000000e+00> : vector<1xf32>
      %124 = vector.multi_reduction <add>, %123, %cst_45 [1, 2] : vector<1x8x8xf32> to vector<1xf32>
      %125 = vector.shape_cast %124 : vector<1xf32> to vector<1x1x1xf32>
      %126 = vector.extract %125[0, 0, 0] : f32 from vector<1x1x1xf32>
      %127 = arith.addf %119, %126 : f32
      %cst_46 = arith.constant 6.250000e-02 : f32
      %128 = arith.mulf %127, %cst_46 : f32
      %129 = arith.addf %73, %128 : f32
      %c0_47 = arith.constant 0 : index
      %130 = memref.load %arg7[%c0_47] : memref<1xf32, #tpu.memory_space<smem>>
      memref.store %129, %arg7[%c0_47] : memref<1xf32, #tpu.memory_space<smem>>
    } else {
    }
    %c0 = arith.constant 0 : index
    %c0_1 = arith.constant 0 : index
    %3 = vector.load %arg1[%c0, %c0_1] : memref<16x128xf32, #tpu.memory_space<vmem>>, vector<16x128xf32>
    %c0_2 = arith.constant 0 : index
    %c0_3 = arith.constant 0 : index
    %4 = vector.load %arg2[%c0_2, %c0_3] : memref<16x128xf32, #tpu.memory_space<vmem>>, vector<16x128xf32>
    %5 = arith.subf %3, %4 : vector<16x128xf32>
    %c0_4 = arith.constant 0 : index
    %c0_5 = arith.constant 0 : index
    %6 = vector.load %arg6[%c0_4, %c0_5] : memref<1x128xf32, #tpu.memory_space<vmem>>, vector<1x128xf32>
    %7 = arith.mulf %5, %5 : vector<16x128xf32>
    %cst = arith.constant dense<0.000000e+00> : vector<128xf32>
    %8 = vector.multi_reduction <add>, %7, %cst [0] : vector<16x128xf32> to vector<128xf32>
    %9 = vector.shape_cast %8 : vector<128xf32> to vector<1x128xf32>
    %10 = arith.addf %6, %9 : vector<1x128xf32>
    %c0_6 = arith.constant 0 : index
    %c0_7 = arith.constant 0 : index
    %11 = vector.load %arg6[%c0_6, %c0_7] : memref<1x128xf32, #tpu.memory_space<vmem>>, vector<1x128xf32>
    tpu.vector_store %arg6[%c0_6, %c0_7], %10 {strides = array<i32>} : memref<1x128xf32, #tpu.memory_space<vmem>>, vector<1x128xf32>,
    %c0_i32_8 = arith.constant 0 : i32
    %12 = arith.cmpi eq, %arg0, %c0_i32_8 : i32
    %13 = arith.extui %12 : i1 to i32
    %c0_i32_9 = arith.constant 0 : i32
    %14 = arith.cmpi ne, %13, %c0_i32_9 : i32
    scf.if %14 {
      %c0_10 = arith.constant 0 : index
      %c0_11 = arith.constant 0 : index
      %15 = vector.load %arg6[%c0_10, %c0_11] : memref<1x128xf32, #tpu.memory_space<vmem>>, vector<1x128xf32>
      %16 = vector.shape_cast %15 : vector<1x128xf32> to vector<1x1x128xf32>
      %cst_12 = arith.constant dense<0.000000e+00> : vector<1xf32>
      %17 = vector.multi_reduction <add>, %16, %cst_12 [1, 2] : vector<1x1x128xf32> to vector<1xf32>
      %18 = vector.shape_cast %17 : vector<1xf32> to vector<1x1x1xf32>
      %19 = vector.extract %18[0, 0, 0] : f32 from vector<1x1x1xf32>
      %cst_13 = arith.constant 4.8828125E-4 : f32
      %20 = arith.mulf %19, %cst_13 : f32
      %c0_14 = arith.constant 0 : index
      %21 = memref.load %arg7[%c0_14] : memref<1xf32, #tpu.memory_space<smem>>
      %cst_15 = arith.constant 5.000000e-01 : f32
      %22 = arith.mulf %cst_15, %21 : f32
      %23 = arith.addf %20, %22 : f32
      %c0_16 = arith.constant 0 : index
      %c0_17 = arith.constant 0 : index
      %24 = memref.load %arg5[%c0_16, %c0_17] : memref<1x1xf32, #tpu.memory_space<smem>>
      memref.store %23, %arg5[%c0_16, %c0_17] : memref<1x1xf32, #tpu.memory_space<smem>>
    } else {
    }
    return
  }
  func.func @transform_0(%arg0: i32) -> (i32, i32) {
    %c0_i32 = arith.constant 0 : i32
    %c0_i32_0 = arith.constant 0 : i32
    return %arg0, %c0_i32 : i32, i32
  }
  func.func @transform_1(%arg0: i32) -> (i32, i32) {
    %c0_i32 = arith.constant 0 : i32
    %c0_i32_0 = arith.constant 0 : i32
    return %arg0, %c0_i32 : i32, i32
  }
  func.func @transform_2(%arg0: i32) -> (i32, i32, i32) {
    %c0_i32 = arith.constant 0 : i32
    %c0_i32_0 = arith.constant 0 : i32
    %c0_i32_1 = arith.constant 0 : i32
    %c0_i32_2 = arith.constant 0 : i32
    return %c0_i32, %c0_i32_0, %c0_i32_1 : i32, i32, i32
  }
  func.func @transform_3(%arg0: i32) -> (i32, i32, i32) {
    %c0_i32 = arith.constant 0 : i32
    %c0_i32_0 = arith.constant 0 : i32
    %c0_i32_1 = arith.constant 0 : i32
    %c0_i32_2 = arith.constant 0 : i32
    return %c0_i32, %c0_i32_0, %c0_i32_1 : i32, i32, i32
  }
  func.func @transform_4(%arg0: i32) -> (i32, i32) {
    %c0_i32 = arith.constant 0 : i32
    %c0_i32_0 = arith.constant 0 : i32
    %c0_i32_1 = arith.constant 0 : i32
    return %c0_i32, %c0_i32_0 : i32, i32
  }
}

</mosaic_0001>

<bundles_post_ra>
// kernel: tpu_custom_call.1
= control target key start
LH: loop header
LB: loop body
LE: loop exit
PB: predicated region body
PF: predicated region fallthrough
CT: control target
= control target key end

     0   :  { %9 = vsyncpa [#allocation5], 0  ;;  %s1097_s0 = inlined_call_operand.hbm [shape: f32[16,128], index: 0, kind: input, shape index: {}]   ;;  %s1098_s1 = inlined_call_operand.hbm [shape: f32[16,128], index: 1, kind: input, shape index: {}]   ;;  %s1099_s2 = inlined_call_operand.hbm [shape: f32[2,8,32], index: 2, kind: input, shape index: {}]   ;;  %s1100_s3 = inlined_call_operand.hbm [shape: f32[2,8,32], index: 3, kind: input, shape index: {}]   ;;  %s1101_s4 = inlined_call_operand.hbm [shape: f32[1,1], index: 4, kind: output, shape index: {}]  }
   0x1   :  { %10 = vsyncpa [#allocation8], 0 }
   0x2   :  { %11 = vsyncpa [#allocation11], 0 }
   0x3   :  { %12 = vsyncpa [#allocation6], 0  ;;  %s919_s15 = smov [#allocation7]   ;;  %s920_s17 = smov [#allocation4]  }
   0x4   :  { %s30_s16 = sshll.u32 %s919_s15, 4  ;;  %s18_s18 = sshll.u32 %s920_s17, 4  ;;  %s31_s16 = int_to_ptr.vmem [resolvable:$true] %s30_s16  ;;  %s953_s18 = int_to_ptr.vmem [resolvable:$true] %s18_s18 }
   0x5   :  { %s813_s21 = scalar_lea.hbm %s1098_s1, 256 }
   0x6   :  { %p814_p0 = scmp.ne.s32.totalorder %s1098_s1, %s813_s21  ;;  %p817_p1 = scmp.lt.u32.totalorder %s813_s21, %s1098_s1 }
   0x8   :  { %p819_p2 = pnand %p817_p1, %p814_p0 }
   0xa   :  { %822 = shalt.err (!%p819_p2)
}
   0xb   :  { %s823_s26 = scalar_lea.vmem %s31_s16, 256  ;;  %p828_p4 = scmp.lt.s32.totalorder %s31_s16, %s31_s16 }
   0xc   :  { %p824_p3 = scmp.ne.s32.totalorder %s31_s16, %s823_s26  ;;  %p829_p5 = scmp.lt.s32.totalorder %s823_s26, %s823_s26 }
   0xe   :  { %p830_p6 = por %p829_p5, %p828_p4 }
  0x10   :  { %p831_p7 = pnand %p830_p6, %p824_p3 }
  0x12   :  { %834 = shalt.err (!%p831_p7)
}
  0x13   :  { %s921_s27 = smov 128   ;;  %s922_s28 = smov 8  }
  0x14   :  { %36 = dma.hbm_to_vmem [thread:$0]  %s1098_s1, 256, %s31_s16, [#allocation8], %s921_s27, %s921_s27, %s922_s28  }
  0x15   :  { %s835_s7 = scalar_lea.hbm %s1097_s0, 256 }
  0x16   :  { %p836_p8 = scmp.ne.s32.totalorder %s1097_s0, %s835_s7  ;;  %p839_p9 = scmp.lt.u32.totalorder %s835_s7, %s1097_s0 }
  0x18   :  { %p841_p10 = pnand %p839_p9, %p836_p8 }
  0x1a   :  { %844 = shalt.err (!%p841_p10)
}
  0x1b   :  { %s845_s12 = scalar_lea.vmem %s953_s18, 256  ;;  %p850_p12 = scmp.lt.s32.totalorder %s953_s18, %s953_s18 }
  0x1c   :  { %p846_p11 = scmp.ne.s32.totalorder %s953_s18, %s845_s12  ;;  %p851_p13 = scmp.lt.s32.totalorder %s845_s12, %s845_s12 }
  0x1e   :  { %p852_p0 = por %p851_p13, %p850_p12 }
  0x20   :  { %p853_p1 = pnand %p852_p0, %p846_p11 }
  0x22   :  { %856 = shalt.err (!%p853_p1)
}
  0x23   :  { %24 = dma.hbm_to_vmem [thread:$0]  %s1097_s0, 256, %s953_s18, [#allocation5], %s921_s27, %s921_s27, %s922_s28  }
  0x24   :  { %s923_s14 = smov [#allocation9]   ;;  %s924_s16 = smov [#allocation10]  }
  0x25   :  { %s42_s15 = sshll.u32 %s923_s14, 4  ;;  %s54_s17 = sshll.u32 %s924_s16, 4  ;;  %s43_s15 = int_to_ptr.vmem [resolvable:$true] %s42_s15  ;;  %s990_s17 = int_to_ptr.vmem [resolvable:$true] %s54_s17 }
  0x26   :  { %s857_s21 = scalar_lea.hbm %s1099_s2, 256 }
  0x27   :  { %p858_p2 = scmp.ne.s32.totalorder %s1099_s2, %s857_s21  ;;  %p861_p3 = scmp.lt.u32.totalorder %s857_s21, %s1099_s2 }
  0x29   :  { %p863_p4 = pnand %p861_p3, %p858_p2 }
  0x2b   :  { %866 = shalt.err (!%p863_p4)
}
  0x2c   :  { %s867_s0 = scalar_lea.vmem %s43_s15, 256  ;;  %p872_p6 = scmp.lt.s32.totalorder %s43_s15, %s43_s15 }
  0x2d   :  { %p868_p5 = scmp.ne.s32.totalorder %s43_s15, %s867_s0  ;;  %p873_p7 = scmp.lt.s32.totalorder %s867_s0, %s867_s0 }
  0x2f   :  { %p874_p8 = por %p873_p7, %p872_p6 }
  0x31   :  { %p875_p9 = pnand %p874_p8, %p868_p5 }
  0x33   :  { %878 = shalt.err (!%p875_p9)
}
  0x34   :  { %48 = dma.hbm_to_vmem [thread:$0]  %s1099_s2, 256, %s43_s15, [#allocation8], %s921_s27, %s921_s27, %s922_s28  }
  0x35   :  { %s879_s5 = scalar_lea.hbm %s1100_s3, 256 }
  0x36   :  { %p880_p10 = scmp.ne.s32.totalorder %s1100_s3, %s879_s5  ;;  %p883_p11 = scmp.lt.u32.totalorder %s879_s5, %s1100_s3 }
  0x38   :  { %p885_p12 = pnand %p883_p11, %p880_p10 }
  0x3a   :  { %888 = shalt.err (!%p885_p12)
}
  0x3b   :  { %s889_s10 = scalar_lea.vmem %s990_s17, 256  ;;  %p894_p0 = scmp.lt.s32.totalorder %s990_s17, %s990_s17 }
  0x3c   :  { %p890_p13 = scmp.ne.s32.totalorder %s990_s17, %s889_s10  ;;  %p895_p1 = scmp.lt.s32.totalorder %s889_s10, %s889_s10 }
  0x3e   :  { %p896_p2 = por %p895_p1, %p894_p0 }
  0x40   :  { %p897_p3 = pnand %p896_p2, %p890_p13 }
  0x42   :  { %900 = shalt.err (!%p897_p3)
}
  0x43   :  { %60 = dma.hbm_to_vmem [thread:$0]  %s1100_s3, 256, %s990_s17, [#allocation11], %s921_s27, %s921_s27, %s922_s28  }
  0x44   :  { %911 = dma.done.wait [#allocation5], 256  }
  0x45   :  { %912 = vsyncadd [#allocation5], 4294967040 }
  0x46   :  { %913 = dma.done.wait [#allocation8], 512  }
  0x47   :  { %914 = vsyncadd [#allocation8], 4294966784 }
  0x48   :  { %915 = dma.done.wait [#allocation11], 256  }
  0x49   :  { %916 = vsyncadd [#allocation11], 4294967040  ;;  %v925_v0 = vmov 0.0   ;;  %vm926_vm0 = vmmov 0   ;;  %vm82_vm1 = vcmask 261120   ;;  %v78_v1 = vld [vmem:[#allocation9] sm:$0xff] }
  0x4a   :  { %736 = vmatprep.subr.mxu1 %v925_v0  ;;  %77 = vst [vmem:[#allocation2] sm:$0x1] %v925_v0  ;;  %751 = vmatprep.subr.mxu0 %v925_v0  ;;  %v79_v2 = vld [vmem:[#allocation9 + $0x8] sm:$0xff]  ;;  %v80_v3 = vld [vmem:[#allocation10] sm:$0xff]  ;;  %v81_v4 = vld [vmem:[#allocation10 + $0x8] sm:$0xff]  ;;  %vm300_vm2 = vcmask 64512  }
  0x4b   :  { %738 = vmatprep.mubr.msk.f32.mxu1 %vm926_vm0, %v925_v0  ;;  %753 = vmatprep.mubr.msk.f32.mxu0 %vm926_vm0, %v925_v0  ;;  %vm679_vm3 = vcmask 1040384   ;;  %s901_s24 = scalar_lea.hbm %s1101_s4, 16 }
  0x4c   :  { %737 = vmatpush3.xpose.msk.msra.mxu1 %vm82_vm1, %v78_v1  ;;  %752 = vmatpush3.xpose.msk.msra.mxu0 %vm82_vm1, %v79_v2  ;;  %p902_p4 = scmp.ne.s32.totalorder %s1101_s4, %s901_s24  ;;  %p905_p5 = scmp.lt.u32.totalorder %s901_s24, %s1101_s4 }
  0x4d   :  { %741 = vmatprep.subr.mxu1 %v925_v0  ;;  %756 = vmatprep.subr.mxu0 %v925_v0 }
  0x4e   :  { %p907_p6 = pnand %p905_p5, %p902_p4 }
  0x4f   :  { %739 = vmatmul.mubr.msk.f32.vlgmr.msra.gmra.mrb[0].mxu1 %vm82_vm1, %v80_v3  ;;  %754 = vmatmul.mubr.msk.f32.vlgmr.msra.gmra.mrb[0].mxu0 %vm82_vm1, %v81_v4 }
  0x50   :  { %742 = vmatpush3.xpose.msk.msra.mxu1 %vm82_vm1, %v80_v3  ;;  %757 = vmatpush3.xpose.msk.msra.mxu0 %vm82_vm1, %v81_v4 }
  0x51   :  { %743 = vmatprep.mubr.msk.f32.mxu1 %vm926_vm0, %v925_v0  ;;  %758 = vmatprep.mubr.msk.f32.mxu0 %vm926_vm0, %v925_v0 }
  0x52   :  { %746 = vmatprep.subr.mxu1 %v925_v0  ;;  %761 = vmatprep.subr.mxu0 %v925_v0 }
  0x53   :  { %744 = vmatmul.mubr.msk.f32.vlgmr.msra.gmra.mrb[2].mxu1 %vm82_vm1, %v80_v3  ;;  %759 = vmatmul.mubr.msk.f32.vlgmr.msra.gmra.mrb[2].mxu0 %vm82_vm1, %v81_v4 }
  0x54   :  { %747 = vmatpush3.xpose.msk.msra.mxu1 %vm82_vm1, %v78_v1  ;;  %762 = vmatpush3.xpose.msk.msra.mxu0 %vm82_vm1, %v79_v2 }
  0x55   :  { %748 = vmatprep.mubr.msk.f32.mxu1 %vm926_vm0, %v925_v0  ;;  %763 = vmatprep.mubr.msk.f32.mxu0 %vm926_vm0, %v925_v0 }
  0x5b   :  { %749 = vmatmul.mubr.msk.f32.vlgmr.msra.gmra.mrb[2].mxu1 %vm82_vm1, %v78_v1  ;;  %764 = vmatmul.mubr.msk.f32.vlgmr.msra.gmra.mrb[2].mxu0 %vm82_vm1, %v79_v2 }
 0x122   :  { %v1045_v5 = vpop.f32.mrb[0].mxu1  ;;  %v1047_v6 = vpop.f32.mrb[0].mxu0 }
 0x123   :  { %v740_v7 = vpop.f32.mrb[1].mxu1  ;;  %v312_v8 = vsel %vm300_vm2, %v1045_v5, -inf  ;;  %v755_v9 = vpop.f32.mrb[1].mxu0  ;;  %v597_v10 = vsel %vm300_vm2, %v1047_v6, -inf }
 0x124   :  { %313 = vmax.xlane.f32.xlu0 %v312_v8  ;;  %v324_v11 = vrot.slane %v312_v8, 4  ;;  %v609_v12 = vrot.slane %v597_v10, 4 }
 0x126   :  { %v325_v13 = vmax.f32 %v312_v8, %v324_v11  ;;  %v610_v14 = vmax.f32 %v597_v10, %v609_v12 }
 0x128   :  { %v326_v15 = vrot.slane %v325_v13, 2  ;;  %v611_v16 = vrot.slane %v610_v14, 2  ;;  %598 = vmax.xlane.f32.xlu0 %v597_v10 }
 0x12a   :  { %v327_v17 = vmax.f32 %v325_v13, %v326_v15  ;;  %v612_v18 = vmax.f32 %v610_v14, %v611_v16 }
 0x12c   :  { %v328_v19 = vrot.slane %v327_v17, 1  ;;  %v613_v20 = vrot.slane %v612_v18, 1 }
 0x12e   :  { %v329_v21 = vmax.f32 %v327_v17, %v328_v19  ;;  %v614_v22 = vmax.f32 %v612_v18, %v613_v20  ;;  %v295_v23 = vpop.f32.mrb[2].mxu1  ;;  %v581_v24 = vpop.f32.mrb[2].mxu0  ;;  %v657_v17 = vld [vmem:[#allocation4] sm:$0xff]  ;;  %v658_v18 = vld [vmem:[#allocation4 + $0x8] sm:$0xff]  ;;  %v659_v19 = vld [vmem:[#allocation7] sm:$0xff] }
 0x12f   :  { %v299_v25 = vmul.f32 0.5, %v295_v23  ;;  %v750_v26 = vpop.f32.mrb[3].mxu1  ;;  %v765_v27 = vpop.f32.mrb[3].mxu0  ;;  %v585_v30 = vmul.f32 0.5, %v581_v24  ;;  %v660_v20 = vld [vmem:[#allocation7 + $0x8] sm:$0xff] }
 0x130   :  { %v330_v28 = vsub.f32 %v1045_v5, %v329_v21  ;;  %v615_v29 = vsub.f32 %v1047_v6, %v614_v22 }
 0x131   :  { %v301_v31 = vsel %vm300_vm2, %v299_v25, -inf  ;;  %v586_v34 = vsel %vm300_vm2, %v585_v30, -inf }
 0x132   :  { %v331_v32 = vmul.f32 1.442695, %v330_v28  ;;  %v616_v33 = vmul.f32 1.442695, %v615_v29  ;;  %302 = vmax.xlane.f32.xlu1 %v301_v31  ;;  %v663_v31 = vld [vmem:[#allocation2] sm:$0x1] }
 0x134   :  { %789 = vpow2.f32 %v331_v32 }
 0x135   :  { %791 = vpow2.f32 %v616_v33 }
 0x136   :  { %587 = vmax.xlane.f32.xlu1 %v586_v34 }
 0x13e   :  { %v790_v35 = vpop.eup %789 }
 0x13f   :  { %v792_v36 = vpop.eup %791  ;;  %v333_v37 = vsel %vm300_vm2, %v790_v35, 0.0 }
 0x140   :  { %v334_v38 = vrot.slane %v333_v37, 4  ;;  %v618_v39 = vsel %vm300_vm2, %v792_v36, 0.0 }
 0x141   :  { %v619_v40 = vrot.slane %v618_v39, 4 }
 0x142   :  { %v335_v41 = vadd.f32 %v334_v38, %v333_v37 }
 0x143   :  { %v620_v42 = vadd.f32 %v619_v40, %v618_v39 }
 0x144   :  { %v336_v43 = vrot.slane %v335_v41, 2 }
 0x145   :  { %v621_v44 = vrot.slane %v620_v42, 2 }
 0x146   :  { %v337_v45 = vadd.f32 %v336_v43, %v335_v41 }
 0x147   :  { %v622_v46 = vadd.f32 %v621_v44, %v620_v42 }
 0x148   :  { %v338_v47 = vrot.slane %v337_v45, 1 }
 0x149   :  { %v623_v48 = vrot.slane %v622_v46, 1 }
 0x14a   :  { %v339_v49 = vadd.f32 %v338_v47, %v337_v45 }
 0x14b   :  { %v624_v50 = vadd.f32 %v623_v48, %v622_v46 }
 0x14c   :  { %793 = vlog2.f32 %v339_v49 }
 0x14d   :  { %795 = vlog2.f32 %v624_v50 }
 0x156   :  { %v794_v51 = vpop.eup %793 }
 0x157   :  { %v796_v52 = vpop.eup %795  ;;  %v341_v53 = vmul.f32 0.6931472, %v794_v51 }
 0x158   :  { %v626_v54 = vmul.f32 0.6931472, %v796_v52 }
 0x159   :  { %v1059_v55 = vadd.f32 %v341_v53, %v329_v21  ;;  %v661_v21 = vsub.f32 %v657_v17, %v659_v19 }
 0x15a   :  { %v1061_v56 = vadd.f32 %v626_v54, %v614_v22  ;;  %v662_v22 = vsub.f32 %v658_v18, %v660_v20 }
 0x15b   :  { %v355_v57 = vsub.f32 %v1059_v55, %v1045_v5  ;;  %v664_v23 = vmul.f32 %v661_v21, %v661_v21 }
 0x15c   :  { %v640_v58 = vsub.f32 %v1061_v56, %v1047_v6  ;;  %v665_v24 = vmul.f32 %v662_v22, %v662_v22 }
 0x1b1   :  { %v314_v59 = vpop.xlane.xlu0 %313 }
 0x1b2   :  { %v315_v60 = vsub.f32 %v1045_v5, %v314_v59 }
 0x1b4   :  { %v316_v61 = vmul.f32 1.442695, %v315_v60 }
 0x1b5   :  { %v599_v62 = vpop.xlane.xlu0 %598 }
 0x1b6   :  { %797 = vpow2.f32 %v316_v61  ;;  %v600_v63 = vsub.f32 %v1047_v6, %v599_v62 }
 0x1b8   :  { %v601_v0 = vmul.f32 1.442695, %v600_v63 }
 0x1ba   :  { %799 = vpow2.f32 %v601_v0 }
 0x1bf   :  { %v303_v1 = vpop.xlane.xlu1 %302 }
 0x1c0   :  { %v798_v2 = vpop.eup %797  ;;  %v304_v3 = vsub.f32 %v299_v25, %v303_v1  ;;  %v666_v25 = vadd.f32 %v665_v24, %v664_v23 }
 0x1c1   :  { %v318_v4 = vsel %vm300_vm2, %v798_v2, 0.0 }
 0x1c2   :  { %v305_v7 = vmul.f32 1.442695, %v304_v3  ;;  %319 = vadd.xlane.f32.xlu0 %v318_v4  ;;  %v667_v26 = vrot.slane %v666_v25, 4 }
 0x1c3   :  { %v588_v8 = vpop.xlane.xlu1 %587 }
 0x1c4   :  { %v800_v9 = vpop.eup %799  ;;  %801 = vpow2.f32 %v305_v7  ;;  %v589_v10 = vsub.f32 %v585_v30, %v588_v8  ;;  %v668_v27 = vadd.f32 %v667_v26, %v666_v25 }
 0x1c5   :  { %v603_v11 = vsel %vm300_vm2, %v800_v9, 0.0 }
 0x1c6   :  { %v590_v12 = vmul.f32 1.442695, %v589_v10  ;;  %604 = vadd.xlane.f32.xlu1 %v603_v11  ;;  %v669_v28 = vrot.slane %v668_v27, 2 }
 0x1c8   :  { %803 = vpow2.f32 %v590_v12  ;;  %v670_v29 = vadd.f32 %v669_v28, %v668_v27 }
 0x1ca   :  { %v671_v30 = vrot.slane %v670_v29, 1 }
 0x1cc   :  { %v672_v32 = vadd.f32 %v671_v30, %v670_v29 }
 0x1ce   :  { %v802_v13 = vpop.eup %801  ;;  %v673_v33 = vadd.f32 %v672_v32, %v663_v31 }
 0x1cf   :  { %v307_v14 = vsel %vm300_vm2, %v802_v13, 0.0 }
 0x1d0   :  { %308 = vadd.xlane.f32.xlu0 %v307_v14  ;;  %674 = vst [vmem:[#allocation2] sm:$0x1] %v673_v33 }
 0x1d2   :  { %v804_v15 = vpop.eup %803 }
 0x1d3   :  { %v592_v16 = vsel %vm300_vm2, %v804_v15, 0.0 }
 0x1d4   :  { %593 = vadd.xlane.f32.xlu1 %v592_v16 }
 0x1d7   :  { %v678_v60 = vld [vmem:[#allocation2] sm:$0x1] }
 0x24f   :  { %v320_v34 = vpop.xlane.xlu0 %319 }
 0x250   :  { %805 = vlog2.f32 %v320_v34 }
 0x253   :  { %v605_v35 = vpop.xlane.xlu1 %604 }
 0x254   :  { %807 = vlog2.f32 %v605_v35 }
 0x25a   :  { %v806_v37 = vpop.eup %805 }
 0x25b   :  { %v322_v38 = vmul.f32 0.6931472, %v806_v37 }
 0x25d   :  { %v309_v36 = vpop.xlane.xlu0 %308  ;;  %v323_v41 = vadd.f32 %v322_v38, %v314_v59 }
 0x25e   :  { %809 = vrcp.f32 %v309_v36  ;;  %v808_v40 = vpop.eup %807 }
 0x25f   :  { %v607_v42 = vmul.f32 0.6931472, %v808_v40  ;;  %v343_v46 = vsub.f32 %v323_v41, %v1045_v5 }
 0x261   :  { %v594_v39 = vpop.xlane.xlu1 %593  ;;  %v608_v44 = vadd.f32 %v607_v42, %v599_v62 }
 0x262   :  { %811 = vrcp.f32 %v594_v39 }
 0x263   :  { %v628_v53 = vsub.f32 %v608_v44, %v1047_v6 }
 0x268   :  { %v810_v43 = vpop.eup %809 }
 0x269   :  { %v311_v45 = vmul.f32 %v810_v43, %v802_v13 }
 0x26b   :  { %v344_v47 = vmul.f32 %v343_v46, %v311_v45  ;;  %v356_v48 = vmul.f32 %v355_v57, %v311_v45  ;;  %v680_v57 = vsel %vm679_vm3, %v678_v60, 0.0 }
 0x26c   :  { %v812_v49 = vpop.eup %811 }
 0x26d   :  { %v345_v50 = vsel %vm300_vm2, %v344_v47, 0.0  ;;  %v357_v51 = vsel %vm300_vm2, %v356_v48, 0.0  ;;  %v596_v52 = vmul.f32 %v812_v49, %v804_v15 }
 0x26e   :  { %346 = vadd.xlane.f32.xlu0 %v345_v50  ;;  %358 = vadd.xlane.f32.xlu1 %v357_v51 }
 0x26f   :  { %v641_v54 = vmul.f32 %v640_v58, %v596_v52  ;;  %v629_v59 = vmul.f32 %v628_v53, %v596_v52 }
 0x271   :  { %v642_v5 = vsel %vm300_vm2, %v641_v54, 0.0  ;;  %v630_v55 = vsel %vm300_vm2, %v629_v59, 0.0 }
 0x272   :  { %643 = vadd.xlane.f32.xlu1 %v642_v5  ;;  %631 = vadd.xlane.f32.xlu0 %v630_v55 }
 0x276   :  { %681 = vadd.xlane.f32.xlu0 %v680_v57 }
 0x2fb   :  { %v347_v61 = vpop.xlane.xlu0 %346  ;;  %v359_v62 = vpop.xlane.xlu1 %358 }
 0x2fc   :  { %v348_v63 = vrot.slane %v347_v61, 4  ;;  %v360_v0 = vrot.slane %v359_v62, 4 }
 0x2fe   :  { %v349_v1 = vadd.f32 %v348_v63, %v347_v61  ;;  %v361_v2 = vadd.f32 %v360_v0, %v359_v62 }
 0x2ff   :  { %v632_v3 = vpop.xlane.xlu0 %631  ;;  %v644_v6 = vpop.xlane.xlu1 %643 }
 0x300   :  { %v350_v56 = vrot.slane %v349_v1, 2  ;;  %v362_v58 = vrot.slane %v361_v2, 2  ;;  %v633_v4 = vrot.slane %v632_v3, 4  ;;  %v645_v7 = vrot.slane %v644_v6, 4 }
 0x302   :  { %v634_v8 = vadd.f32 %v633_v4, %v632_v3  ;;  %v646_v9 = vadd.f32 %v645_v7, %v644_v6  ;;  %v351_v10 = vadd.f32 %v350_v56, %v349_v1  ;;  %v363_v11 = vadd.f32 %v362_v58, %v361_v2 }
 0x303   :  { %v682_v12 = vpop.xlane.xlu0 %681 }
 0x304   :  { %v635_v13 = vrot.slane %v634_v8, 2  ;;  %v647_v14 = vrot.slane %v646_v9, 2  ;;  %v683_v15 = vrot.slane %v682_v12, 4  ;;  %v352_v16 = vrot.slane %v351_v10, 1 }
 0x305   :  { %v364_v17 = vrot.slane %v363_v11, 1 }
 0x306   :  { %v648_v18 = vadd.f32 %v647_v14, %v646_v9  ;;  %v684_v19 = vadd.f32 %v683_v15, %v682_v12  ;;  %v353_v20 = vadd.f32 %v352_v16, %v351_v10  ;;  %v636_v21 = vadd.f32 %v635_v13, %v634_v8 }
 0x307   :  { %v365_v22 = vadd.f32 %v364_v17, %v363_v11 }
 0x308   :  { %v685_v23 = vrot.slane %v684_v19, 2  ;;  %770 = vpush %v353_v20  ;;  %v637_v24 = vrot.slane %v636_v21, 1  ;;  %v649_v25 = vrot.slane %v648_v18, 1 }
 0x309   :  { %772 = vpush %v365_v22 }
 0x30a   :  { %v686_v26 = vadd.f32 %v685_v23, %v684_v19  ;;  %v638_v27 = vadd.f32 %v637_v24, %v636_v21  ;;  %v650_v28 = vadd.f32 %v649_v25, %v648_v18 }
 0x30c   :  { %774 = vpush %v638_v27  ;;  %v687_v29 = vrot.slane %v686_v26, 1 }
 0x30d   :  { %776 = vpush %v650_v28 }
 0x30e   :  { %v688_v30 = vadd.f32 %v687_v29, %v686_v26 }
 0x310   :  { %778 = vpush %v688_v30 }
 0x339   :  { %s771_s3 = spop %770 }
 0x33a   :  { %s773_s27 = spop %772 }
 0x33b   :  { %s367_s28 = sadd.f32 %s773_s27, %s771_s3 }
 0x33d   :  { %s775_s12 = spop %774  ;;  %s368_s14 = smul.f32 0.0625, %s367_s28 }
 0x33e   :  { %s777_s1 = spop %776 }
 0x33f   :  { %s652_s13 = sadd.f32 %s777_s1, %s775_s12 }
 0x341   :  { %s653_s15 = smul.f32 0.0625, %s652_s13  ;;  %s779_s16 = spop %778 }
 0x342   :  { %s690_s19 = smul.f32 0.00048828125, %s779_s16 }
 0x343   :  { %s654_s17 = sadd.f32 %s653_s15, %s368_s14 }
 0x345   :  { %s692_s20 = smul.f32 0.5, %s654_s17 }
 0x347   :  { %s693_s21 = sadd.f32 %s692_s20, %s690_s19 }
 0x349   :  { %695 = sst [smem:[#allocation12]] %s693_s21 }
 0x34a   :  { %910 = shalt.err (!%p907_p6)
}
 0x34b   :  { %s927_s29 = smov [#allocation12]  }
 0x34c   :  { %703 = dma.smem_to_hbm %s927_s29, 16, %s1101_s4, [#allocation6]  }
 0x34d   :  { %917 = dma.done.wait [#allocation6], 16  }
 0x34e   :  { %918 = vsyncadd [#allocation6], 4294967280 }
 0x34f   :  { %707 = sfence }
 0x350   :  { %708 = vsyncpa [#allocation5], 1 }
 0x351   :  { %709 = vsyncpa [#allocation8], 1 }
 0x352   :  { %710 = vsyncpa [#allocation11], 1 }
 0x353   :  { %711 = vsyncpa [#allocation6], 1 }

</bundles_post_ra>
